<compile_context>
chip_gen: v7x
topology: tpu7x:2x2x1
jax: 0.10.0
libtpu: 0.0.40
codegen_flags: <defaults>
</compile_context>

<pallas_src>
import functools

import jax
import jax.numpy as jnp
from jax import lax
from jax.experimental import pallas as pl
from jax.experimental.pallas import tpu as pltpu


def _round_up(x: int, m: int) -> int:
    return ((x + m - 1) // m) * m


def _nonneg_linear_kernel_fused_out(x_ref, w_ref, b_ref, o_ref, *, compute_dtype):
    """f32-output path: the resident (tm, tn) output tile is the accumulator."""
    k = pl.program_id(2)

    @pl.when(k == 0)
    def _():
        # Fold the bias add into the accumulator init (one broadcast per (i,j)
        # tile instead of a separate epilogue pass).
        o_ref[...] = jnp.broadcast_to(b_ref[...].astype(jnp.float32), o_ref.shape)

    x = x_ref[...]                                                 # (tm, tk)
    # clamp(W, min=0) with a dtype-matched zero; kept in-kernel (free VALU).
    w = jnp.maximum(w_ref[...], jnp.zeros((), dtype=w_ref.dtype))  # (tn, tk)
    if compute_dtype is not None:
        x = x.astype(compute_dtype)
        w = w.astype(compute_dtype)

    # Contract the shared K axis of both tiles directly: (tm,tk) x (tn,tk)
    # -> (tm,tn).  No explicit transpose in front of the MXU.
    o_ref[...] += lax.dot_general(
        x, w,
        dimension_numbers=(((1,), (1,)), ((), ())),
        preferred_element_type=jnp.float32,
    )


def _nonneg_linear_kernel_scratch(x_ref, w_ref, b_ref, o_ref, acc_ref, *, compute_dtype):
    """Generic path (non-f32 output): f32 VMEM scratch accumulator + final cast."""
    k = pl.program_id(2)

    @pl.when(k == 0)
    def _():
        acc_ref[...] = jnp.broadcast_to(b_ref[...].astype(jnp.float32), acc_ref.shape)

    x = x_ref[...]
    w = jnp.maximum(w_ref[...], jnp.zeros((), dtype=w_ref.dtype))
    if compute_dtype is not None:
        x = x.astype(compute_dtype)
        w = w.astype(compute_dtype)

    acc_ref[...] += lax.dot_general(
        x, w,
        dimension_numbers=(((1,), (1,)), ((), ())),
        preferred_element_type=jnp.float32,
    )

    @pl.when(k == pl.num_programs(2) - 1)
    def _():
        o_ref[...] = acc_ref[...].astype(o_ref.dtype)


def nonneg_linear(x, weight, bias, *, tm=256, tn=256, tk=2048, compute_dtype=None):
    """y = x @ clamp(weight, 0).T + bias, with f32 accumulation.

    x: (B, In); weight: (Out, In); bias: (Out,) -> (B, Out).

    compute_dtype: None (exact f32, default) or jnp.bfloat16 (MXU fast path,
    f32 accumulation preserved; ~1e-3 relative error vs the f32 reference).
    """
    B, In = x.shape
    Out, In_w = weight.shape
    assert In == In_w, "weight in_features must match x"
    assert bias.shape == (Out,)

    # Clamp tile sizes to the (aligned) problem size, keep TPU alignment:
    # sublane multiple of 8 for M, lane multiple of 128 for N and K.
    tm = min(tm, _round_up(B, 8))
    tn = min(tn, _round_up(Out, 128))
    tk = min(tk, _round_up(In, 128))

    Mp = _round_up(B, tm)
    Np = _round_up(Out, tn)
    Kp = _round_up(In, tk)

    # v7x has 2 TensorCores; dimension_semantics=("parallel", ...) only helps
    # if there are >= 2 parallel (i, j) tiles.  Split one axis when possible.
    if Mp // tm == 1 and Np // tn == 1:
        if tn >= 256 and tn % 256 == 0:
            tn //= 2
            Np = _round_up(Out, tn)
        elif tm >= 16:
            tm = _round_up(tm // 2, 8)
            Mp = _round_up(B, tm)

    # Zero padding is semantics-preserving (clamp(0) == 0 for padded K cols;
    # padded M rows / N cols are sliced away).  Skipped when already aligned
    # so aligned hot-loop calls do not re-stream W through HBM.
    x_p = x if (Mp == B and Kp == In) else jnp.pad(x, ((0, Mp - B), (0, Kp - In)))
    w_p = weight if (Np == Out and Kp == In) else jnp.pad(
        weight, ((0, Np - Out), (0, Kp - In)))
    b_p = (bias if Np == Out else jnp.pad(bias, (0, Np - Out))).reshape(1, Np)

    grid = (Mp // tm, Np // tn, Kp // tk)

    out_dtype = x.dtype
    fuse_acc_into_out = jnp.dtype(out_dtype) == jnp.dtype(jnp.float32)
    if fuse_acc_into_out:
        kernel = functools.partial(
            _nonneg_linear_kernel_fused_out, compute_dtype=compute_dtype)
        scratch_shapes = []
    else:
        kernel = functools.partial(
            _nonneg_linear_kernel_scratch, compute_dtype=compute_dtype)
        scratch_shapes = [pltpu.VMEM((tm, tn), jnp.float32)]

    x_bytes = jnp.dtype(x_p.dtype).itemsize
    w_bytes = jnp.dtype(w_p.dtype).itemsize
    o_bytes = jnp.dtype(out_dtype).itemsize

    # VMEM footprint estimate: double-buffered inputs/outputs + clamped-W /
    # compute temp + (optional) scratch accumulator.  Cap at 64 MiB so the
    # limit is always legal on v7x while exceeding v5e's 16 MiB default.
    est_vmem = (2 * tm * tk * x_bytes
                + 2 * tn * tk * w_bytes
                + tn * tk * 4
                + 2 * tm * tn * o_bytes
                + tm * tn * 4
                + 2 * tn * 4)
    vmem_limit = int(min(max(est_vmem + (8 << 20), 32 << 20), 64 << 20))

    cost = pl.CostEstimate(
        flops=2 * B * Out * In,
        transcendentals=0,
        bytes_accessed=(B * In * x_bytes + Out * In * w_bytes
                        + Out * 4 + B * Out * o_bytes),
    )

    out_p = pl.pallas_call(
        kernel,
        out_shape=jax.ShapeDtypeStruct((Mp, Np), out_dtype),
        grid_spec=pltpu.PrefetchScalarGridSpec(
            num_scalar_prefetch=0,
            grid=grid,
            in_specs=[
                pl.BlockSpec((tm, tk), lambda i, j, k: (i, k)),   # x tile
                pl.BlockSpec((tn, tk), lambda i, j, k: (j, k)),   # W tile (Out, In)
                pl.BlockSpec((1, tn), lambda i, j, k: (0, j)),    # bias tile
            ],
            out_specs=pl.BlockSpec((tm, tn), lambda i, j, k: (i, j)),
            scratch_shapes=scratch_shapes,
        ),
        compiler_params=pltpu.CompilerParams(
            dimension_semantics=("parallel", "parallel", "arbitrary"),
            vmem_limit_bytes=vmem_limit,
        ),
        cost_estimate=cost,
    )(x_p, w_p, b_p)

    if Mp == B and Np == Out:
        return out_p
    return out_p[:B, :Out]


if __name__ == "__main__":
    key = jax.random.PRNGKey(0)
    k_x, k_w = jax.random.split(key)

    batch, in_features, out_features = 8, 32, 16

    # Example input (any real values; weights get clamped, not inputs).
    x = jax.random.normal(k_x, (batch, in_features), dtype=jnp.float32)

    # Deterministic parameter init matching the module's _initialize_weights:
    #   weight ~ Uniform[0, 1), bias = 0
    weight = jax.random.uniform(
        k_w, (out_features, in_features), dtype=jnp.float32, minval=0.0, maxval=1.0
    )
    bias = jnp.zeros((out_features,), dtype=jnp.float32)

    # Reference in plain JAX (same semantics as F.linear with clamped weight).
    ref = x @ jnp.maximum(weight, 0.0).T + bias

    # Exact f32 path.
    out = nonneg_linear(x, weight, bias)
    out = jax.block_until_ready(out)
    assert out.shape == (batch, out_features)
    assert jnp.allclose(out, ref, atol=1e-5, rtol=1e-5)

    # bf16 fast path (f32 accumulation kept) -- looser tolerance.
    out_bf16 = nonneg_linear(x, weight, bias, compute_dtype=jnp.bfloat16)
    out_bf16 = jax.block_until_ready(out_bf16)
    assert jnp.allclose(out_bf16, ref, atol=5e-2, rtol=5e-2)

    print("KERNEL_OK")
</pallas_src>

<mosaic_0001>
module attributes {stable_mosaic.version = 11 : i64} {
  func.func @_nonneg_linear_kernel_fused_out(%arg0: i32, %arg1: i32, %arg2: i32, %arg3: memref<8x128xf32, #tpu.memory_space<vmem>>, %arg4: memref<128x128xf32, #tpu.memory_space<vmem>>, %arg5: memref<1x128xf32, #tpu.memory_space<vmem>>, %arg6: memref<8x128xf32, #tpu.memory_space<vmem>>) attributes {dimension_semantics = [#tpu.dimension_semantics<parallel>, #tpu.dimension_semantics<parallel>, #tpu.dimension_semantics<arbitrary>], iteration_bounds = array<i64: 1, 1, 1>, scalar_prefetch = 0 : i64, scratch_operands = 0 : i64, tpu.core_type = #tpu.core_type<tc>, window_params = [{transform_indices = @transform_0, window_bounds = array<i64: 8, 128>}, {transform_indices = @transform_1, window_bounds = array<i64: 128, 128>}, {transform_indices = @transform_2, window_bounds = array<i64: 1, 128>}, {transform_indices = @transform_3, window_bounds = array<i64: 8, 128>}]} {
    %c0_i32 = arith.constant 0 : i32
    %0 = arith.cmpi eq, %arg2, %c0_i32 : i32
    %1 = arith.extui %0 : i1 to i32
    %c0_i32_0 = arith.constant 0 : i32
    %2 = arith.cmpi ne, %1, %c0_i32_0 : i32
    scf.if %2 {
      %c0_9 = arith.constant 0 : index
      %c0_10 = arith.constant 0 : index
      %11 = vector.load %arg5[%c0_9, %c0_10] : memref<1x128xf32, #tpu.memory_space<vmem>>, vector<1x128xf32>
      %12 = vector.shape_cast %11 : vector<1x128xf32> to vector<1x128xf32>
      %13 = vector.broadcast %12 : vector<1x128xf32> to vector<8x128xf32>
      %c0_11 = arith.constant 0 : index
      %c0_12 = arith.constant 0 : index
      %14 = vector.load %arg6[%c0_11, %c0_12] : memref<8x128xf32, #tpu.memory_space<vmem>>, vector<8x128xf32>
      tpu.vector_store %arg6[%c0_11, %c0_12], %13 {strides = array<i32>} : memref<8x128xf32, #tpu.memory_space<vmem>>, vector<8x128xf32>,
    } else {
    }
    %c0 = arith.constant 0 : index
    %c0_1 = arith.constant 0 : index
    %3 = vector.load %arg3[%c0, %c0_1] : memref<8x128xf32, #tpu.memory_space<vmem>>, vector<8x128xf32>
    %c0_2 = arith.constant 0 : index
    %c0_3 = arith.constant 0 : index
    %4 = vector.load %arg4[%c0_2, %c0_3] : memref<128x128xf32, #tpu.memory_space<vmem>>, vector<128x128xf32>
    %cst = arith.constant 0.000000e+00 : f32
    %5 = vector.broadcast %cst : f32 to vector<128x128xf32>
    %6 = arith.maximumf %4, %5 : vector<128x128xf32>
    %c0_4 = arith.constant 0 : index
    %c0_5 = arith.constant 0 : index
    %7 = vector.load %arg6[%c0_4, %c0_5] : memref<8x128xf32, #tpu.memory_space<vmem>>, vector<8x128xf32>
    %cst_6 = arith.constant dense<0.000000e+00> : vector<8x128xf32>
    %8 = tpu.matmul %3, %6, %cst_6 {dimension_numbers = #tpu.dot_dimension_numbers<[1], [1], [0], [0], [0, 0, 1, 0], [], []>} : vector<8x128xf32>, vector<128x128xf32>, vector<8x128xf32> -> vector<8x128xf32>
    %9 = arith.addf %7, %8 : vector<8x128xf32>
    %c0_7 = arith.constant 0 : index
    %c0_8 = arith.constant 0 : index
    %10 = vector.load %arg6[%c0_7, %c0_8] : memref<8x128xf32, #tpu.memory_space<vmem>>, vector<8x128xf32>
    tpu.vector_store %arg6[%c0_7, %c0_8], %9 {strides = array<i32>} : memref<8x128xf32, #tpu.memory_space<vmem>>, vector<8x128xf32>,
    return
  }
  func.func @transform_0(%arg0: i32, %arg1: i32, %arg2: i32) -> (i32, i32) {
    %c0_i32 = arith.constant 0 : i32
    return %arg0, %arg2 : i32, i32
  }
  func.func @transform_1(%arg0: i32, %arg1: i32, %arg2: i32) -> (i32, i32) {
    %c0_i32 = arith.constant 0 : i32
    return %arg1, %arg2 : i32, i32
  }
  func.func @transform_2(%arg0: i32, %arg1: i32, %arg2: i32) -> (i32, i32) {
    %c0_i32 = arith.constant 0 : i32
    %c0_i32_0 = arith.constant 0 : i32
    return %c0_i32, %arg1 : i32, i32
  }
  func.func @transform_3(%arg0: i32, %arg1: i32, %arg2: i32) -> (i32, i32) {
    %c0_i32 = arith.constant 0 : i32
    return %arg0, %arg1 : i32, i32
  }
}

</mosaic_0001>

<bundles_post_ra>
// kernel: tpu_custom_call.1
= control target key start
LH: loop header
LB: loop body
LE: loop exit
PB: predicated region body
PF: predicated region fallthrough
CT: control target
= control target key end

     0   :  { %8 = vsyncpa [#allocation3], 0  ;;  %s406_s0 = inlined_call_operand.hbm [shape: f32[8,128], index: 0, kind: input, shape index: {}]   ;;  %s407_s1 = inlined_call_operand.hbm [shape: f32[128,128], index: 1, kind: input, shape index: {}]   ;;  %s408_s2 = inlined_call_operand.vmem [shape: f32[1,128], index: 2, kind: input, shape index: {}]   ;;  %s409_s3 = inlined_call_operand.hbm [shape: f32[8,128], index: 3, kind: output, shape index: {}]  }
   0x1   :  { %9 = vsyncpa [#allocation6], 0 }
   0x2   :  { %10 = vsyncpa [#allocation4], 0  ;;  %s332_s12 = smov [#allocation2]   ;;  %s333_s14 = smov [#allocation5]  }
   0x3   :  { %s17_s13 = sshll.u32 %s332_s12, 4  ;;  %s26_s15 = sshll.u32 %s333_s14, 4  ;;  %s18_s13 = int_to_ptr.vmem [resolvable:$true] %s17_s13  ;;  %s360_s15 = int_to_ptr.vmem [resolvable:$true] %s26_s15 }
   0x4   :  { %s260_s18 = scalar_lea.hbm %s406_s0, 128 }
   0x5   :  { %p261_p0 = scmp.ne.s32.totalorder %s406_s0, %s260_s18  ;;  %p264_p1 = scmp.lt.u32.totalorder %s260_s18, %s406_s0 }
   0x7   :  { %p266_p2 = pnand %p264_p1, %p261_p0 }
   0x9   :  { %269 = shalt.err (!%p266_p2)
}
   0xa   :  { %s270_s23 = scalar_lea.vmem %s18_s13, 128  ;;  %p275_p4 = scmp.lt.s32.totalorder %s18_s13, %s18_s13 }
   0xb   :  { %p271_p3 = scmp.ne.s32.totalorder %s18_s13, %s270_s23  ;;  %p276_p5 = scmp.lt.s32.totalorder %s270_s23, %s270_s23 }
   0xd   :  { %p277_p6 = por %p276_p5, %p275_p4 }
   0xf   :  { %p278_p7 = pnand %p277_p6, %p271_p3 }
  0x11   :  { %281 = shalt.err (!%p278_p7)
}
  0x12   :  { %20 = dma.hbm_to_vmem [thread:$0]  %s406_s0, 128, %s18_s13, [#allocation3]  }
  0x13   :  { %s282_s28 = scalar_lea.hbm %s407_s1, 2048 }
  0x14   :  { %p283_p8 = scmp.ne.s32.totalorder %s407_s1, %s282_s28  ;;  %p286_p9 = scmp.lt.u32.totalorder %s282_s28, %s407_s1 }
  0x16   :  { %p288_p10 = pnand %p286_p9, %p283_p8 }
  0x18   :  { %291 = shalt.err (!%p288_p10)
}
  0x19   :  { %s292_s6 = scalar_lea.vmem %s360_s15, 2048  ;;  %p297_p12 = scmp.lt.s32.totalorder %s360_s15, %s360_s15 }
  0x1a   :  { %p293_p11 = scmp.ne.s32.totalorder %s360_s15, %s292_s6  ;;  %p298_p13 = scmp.lt.s32.totalorder %s292_s6, %s292_s6 }
  0x1c   :  { %p299_p0 = por %p298_p13, %p297_p12 }
  0x1e   :  { %p300_p1 = pnand %p299_p0, %p293_p11 }
  0x20   :  { %303 = shalt.err (!%p300_p1)
}
  0x21   :  { %s334_s0 = smov 128   ;;  %s335_s7 = smov 8  }
  0x22   :  { %32 = dma.hbm_to_vmem [thread:$0]  %s407_s1, 2048, %s360_s15, [#allocation6], %s334_s0, %s334_s0, %s335_s7  }
  0x23   :  { %326 = dma.done.wait [#allocation3], 128  }
  0x24   :  { %327 = vsyncadd [#allocation3], 4294967168 }
  0x25   :  { %328 = dma.done.wait [#allocation6], 2048  }
  0x26   :  { %329 = vsyncadd [#allocation6], 4294965248  ;;  %v336_v0 = vmov 0.0|0.0   ;;  %vm337_vm0 = vmmov 0   ;;  %v338_v1 = vmov 0.0   ;;  %v54_v2 = vld [vmem:[#allocation5] sm:$0xff] }
  0x27   :  { %228 = vmatprep.subr.bf16.mxu0 %v336_v0  ;;  %225 = vmatprep.mubr.msk.f32.mxu0 %vm337_vm0, %v338_v1  ;;  %v55_v3 = vld [vmem:[#allocation5 + $0x8] sm:$0xff]  ;;  %v70_v4 = vmax.f32 %v54_v2, 0.0  ;;  %v56_v6 = vld [vmem:[#allocation5 + $0x10] sm:$0xff]  ;;  %v57_v7 = vld [vmem:[#allocation5 + $0x18] sm:$0xff]  ;;  %s339_s11 = smov [#allocation7]  }
  0x28   :  { %v71_v5 = vmax.f32 %v55_v3, 0.0  ;;  %v72_v9 = vmax.f32 %v56_v6, 0.0  ;;  %v73_v10 = vmax.f32 %v57_v7, 0.0  ;;  %v58_v12 = vld [vmem:[#allocation5 + $0x20] sm:$0xff]  ;;  %v59_v13 = vld [vmem:[#allocation5 + $0x28] sm:$0xff]  ;;  %v60_v17 = vld [vmem:[#allocation5 + $0x30] sm:$0xff] }
  0x29   :  { %v74_v14 = vmax.f32 %v58_v12, 0.0  ;;  %v75_v15 = vmax.f32 %v59_v13, 0.0  ;;  %v61_v18 = vld [vmem:[#allocation5 + $0x38] sm:$0xff]  ;;  %v76_v19 = vmax.f32 %v60_v17, 0.0  ;;  %v62_v22 = vld [vmem:[#allocation5 + $0x40] sm:$0xff]  ;;  %v63_v23 = vld [vmem:[#allocation5 + $0x48] sm:$0xff] }
  0x2a   :  { %v229_v8 = vpack.c.bf16 %v71_v5, %v70_v4  ;;  %v232_v11 = vpack.c.bf16 %v73_v10, %v72_v9  ;;  %v77_v20 = vmax.f32 %v61_v18, 0.0  ;;  %v78_v24 = vmax.f32 %v62_v22, 0.0  ;;  %v64_v27 = vld [vmem:[#allocation5 + $0x50] sm:$0xff]  ;;  %v65_v28 = vld [vmem:[#allocation5 + $0x58] sm:$0xff]  ;;  %v66_v32 = vld [vmem:[#allocation5 + $0x60] sm:$0xff]  ;;  %s165_s12 = sshll.u32 %s339_s11, 4  ;;  %s166_s12 = int_to_ptr.vmem [resolvable:$true] %s165_s12 }
  0x2b   :  { %v235_v16 = vpack.c.bf16 %v75_v15, %v74_v14  ;;  %v79_v25 = vmax.f32 %v63_v23, 0.0  ;;  %v80_v29 = vmax.f32 %v64_v27, 0.0  ;;  %v81_v30 = vmax.f32 %v65_v28, 0.0  ;;  %v67_v33 = vld [vmem:[#allocation5 + $0x68] sm:$0xff]  ;;  %v68_v37 = vld [vmem:[#allocation5 + $0x70] sm:$0xff]  ;;  %v69_v38 = vld [vmem:[#allocation5 + $0x78] sm:$0xff]  ;;  %p309_p3 = scmp.lt.s32.totalorder %s166_s12, %s166_s12 }
  0x2c   :  { %230 = vmatpush3.bf16.xpose.msra.mxu0 %v229_v8  ;;  %v238_v21 = vpack.c.bf16 %v77_v20, %v76_v19  ;;  %v82_v34 = vmax.f32 %v66_v32, 0.0  ;;  %v83_v35 = vmax.f32 %v67_v33, 0.0  ;;  %v84_v39 = vmax.f32 %v68_v37, 0.0  ;;  %v53_v42 = vld [vmem:[#allocation2] sm:$0xff]  ;;  %s304_s13 = scalar_lea.vmem %s166_s12, 128 }
  0x2d   :  { %231 = vmatprep.subr.bf16.mxu0 %v336_v0  ;;  %v241_v26 = vpack.c.bf16 %v79_v25, %v78_v24  ;;  %v244_v31 = vpack.c.bf16 %v81_v30, %v80_v29  ;;  %v85_v40 = vmax.f32 %v69_v38, 0.0  ;;  %v175_v43 = vld [vmem:[%s408_s2] ss:$0 sm:$0xff]  ;;  %p305_p2 = scmp.ne.s32.totalorder %s166_s12, %s304_s13  ;;  %p310_p4 = scmp.lt.s32.totalorder %s304_s13, %s304_s13 }
  0x2e   :  { %v247_v36 = vpack.c.bf16 %v83_v35, %v82_v34 }
  0x2f   :  { %v250_v41 = vpack.c.bf16 %v85_v40, %v84_v39  ;;  %p311_p5 = por %p310_p4, %p309_p3 }
  0x31   :  { %p312_p6 = pnand %p311_p5, %p305_p2 }
  0x34   :  { %233 = vmatpush3.bf16.xpose.msra.mxu0 %v232_v11 }
  0x35   :  { %234 = vmatprep.subr.bf16.mxu0 %v336_v0 }
  0x3c   :  { %236 = vmatpush3.bf16.xpose.msra.mxu0 %v235_v16 }
  0x3d   :  { %237 = vmatprep.subr.bf16.mxu0 %v336_v0 }
  0x44   :  { %239 = vmatpush3.bf16.xpose.msra.mxu0 %v238_v21 }
  0x45   :  { %240 = vmatprep.subr.bf16.mxu0 %v336_v0 }
  0x4c   :  { %242 = vmatpush3.bf16.xpose.msra.mxu0 %v241_v26 }
  0x4d   :  { %243 = vmatprep.subr.bf16.mxu0 %v336_v0 }
  0x54   :  { %245 = vmatpush3.bf16.xpose.msra.mxu0 %v244_v31 }
  0x55   :  { %246 = vmatprep.subr.bf16.mxu0 %v336_v0 }
  0x5c   :  { %248 = vmatpush3.bf16.xpose.msra.mxu0 %v247_v36 }
  0x5d   :  { %249 = vmatprep.subr.bf16.mxu0 %v336_v0 }
  0x64   :  { %251 = vmatpush3.bf16.xpose.msra.mxu0 %v250_v41 }
  0x6b   :  { %226 = vmatmul.mubr.f32.vlgmr.msra.gmra.mrb[0].mxu0 %v53_v42 }
 0x13e   :  { %v153_v44 = vpop.f32.mrb[0].mxu0 }
 0x13f   :  { %v157_v45 = vadd.f32 %v175_v43, %v153_v44  ;;  %v227_v46 = vpop.f32.mrb[1].mxu0 }
 0x141   :  { %158 = vst [vmem:[#allocation7] sm:$0xff] %v157_v45 }
 0x142   :  { %315 = shalt.err (!%p312_p6)
}
 0x143   :  { %s316_s16 = scalar_lea.hbm %s409_s3, 128 }
 0x144   :  { %p317_p7 = scmp.ne.s32.totalorder %s409_s3, %s316_s16  ;;  %p320_p8 = scmp.lt.u32.totalorder %s316_s16, %s409_s3 }
 0x146   :  { %p322_p9 = pnand %p320_p8, %p317_p7 }
 0x148   :  { %325 = shalt.err (!%p322_p9)
}
 0x149   :  { %168 = dma.vmem_to_hbm [thread:$0]  %s166_s12, 128, %s409_s3, [#allocation4]  }
 0x14a   :  { %330 = dma.done.wait [#allocation4], 128  }
 0x14b   :  { %331 = vsyncadd [#allocation4], 4294967168 }
 0x14c   :  { %172 = vsyncpa [#allocation3], 1 }
 0x14d   :  { %173 = vsyncpa [#allocation6], 1 }
 0x14e   :  { %174 = vsyncpa [#allocation4], 1 }

</bundles_post_ra>
